<compile_context>
chip_gen: v5e
topology: v5e:2x2
jax: 0.10.0
libtpu: 0.0.40
codegen_flags: <defaults>
</compile_context>

<pallas_src>
import functools

import jax
import jax.numpy as jnp
from jax.experimental import pallas as pl
from jax.experimental.pallas import tpu as pltpu


def cam_head_kernel(x_ref, w_ref, o_ref):
    """One branch, one C-tile: o(K, HW) += W(K, tc) @ X(tc, HW); ReLU at the end.

    x_ref: (tc, HW) bf16  -- C-tile of this branch's features, pixels on lanes.
    w_ref: (K, tc)  bf16  -- classifier weight tile (1x1 conv, no bias).
    o_ref: (K, HW)  f32   -- per-branch CAM; resident accumulator across the
                             C-reduction grid axis.
    """
    k = pl.program_id(1)

    @pl.when(k == 0)
    def _():
        o_ref[...] = jnp.zeros_like(o_ref)

    o_ref[...] += jnp.dot(w_ref[...], x_ref[...],
                          preferred_element_type=jnp.float32)

    @pl.when(k == pl.num_programs(1) - 1)
    def _():
        o_ref[...] = jnp.maximum(o_ref[...], 0.0)   # F.relu


@functools.partial(jax.jit, static_argnames=("tc",))
def cam_head(feat, w_cls, *, tc=512):
    """feat: (2, C, H, W) NCHW feature map; w_cls: (K, C, 1, 1) conv weight.

    Returns (K, H, W) == relu(conv1x1(feat))[0] + relu(conv1x1(feat))[1].flip(-1).
    """
    B, C, H, W = feat.shape
    assert B == 2, "CAM head combines exactly two branches (image + flipped image)"
    K = w_cls.shape[0]
    HW = H * W
    tc = min(tc, C)
    assert C % tc == 0

    # Layout: pure (free) reshape of the native NCHW buffer + bf16 cast.
    # No transpose / flip of the big feature tensor is materialized.
    x = feat.reshape(B, C, HW).astype(jnp.bfloat16)          # (2, C, HW)
    wt = w_cls.reshape(K, C).astype(jnp.bfloat16)            # (K, C)

    out = pl.pallas_call(
        cam_head_kernel,
        out_shape=jax.ShapeDtypeStruct((B, K, HW), jnp.float32),
        grid=(B, C // tc),                                    # (branch, C-reduction)
        in_specs=[
            pl.BlockSpec((None, tc, HW), lambda b, k: (b, k, 0)),
            pl.BlockSpec((K, tc), lambda b, k: (0, k)),
        ],
        out_specs=pl.BlockSpec((None, K, HW), lambda b, k: (b, 0, 0)),
        compiler_params=pltpu.CompilerParams(
            dimension_semantics=("parallel", "arbitrary"),
        ),
    )(x, wt)

    # Tiny epilogue on the (2, K, H, W) CAM (~KBs): branch-1 W-flip + add.
    # Flip commutes with the per-pixel 1x1 conv + ReLU, so this matches
    # relu(conv(x))[0] + relu(conv(x))[1].flip(-1) exactly.
    y = out.reshape(B, K, H, W)
    return y[0] + jnp.flip(y[1], axis=-1)


def cam_head_ref(feat, w_cls):
    """Pure-JAX f32 reference mirroring the PyTorch semantics exactly."""
    K, C = w_cls.shape[0], w_cls.shape[1]
    y = jnp.einsum("bchw,kc->bkhw", feat, w_cls.reshape(K, C))  # 1x1 conv, no bias
    y = jnp.maximum(y, 0.0)                                      # F.relu
    return y[0] + jnp.flip(y[1], axis=-1)                        # x[0] + x[1].flip(-1)


if __name__ == "__main__":
    # Small shapes consistent with the module: batch of 2 (image + h-flip),
    # 2048 classifier input channels, 20 classes, 8x8 spatial map.
    B, C, H, W, K = 2, 2048, 8, 8, 20

    key = jax.random.PRNGKey(0)
    k_feat, k_w = jax.random.split(key)
    # Stand-in for the stage4 output (backbone itself not reproduced, see TODO).
    feat = jax.random.normal(k_feat, (B, C, H, W), dtype=jnp.float32)
    # Deterministic init of the classifier: nn.Conv2d(2048, 20, 1, bias=False).
    w_cls = jax.random.normal(k_w, (K, C, 1, 1), dtype=jnp.float32) * 0.02

    out = cam_head(feat, w_cls)
    out = jax.block_until_ready(out)

    ref = cam_head_ref(feat, w_cls)
    assert out.shape == (K, H, W), out.shape
    # bf16 feature/weight path vs f32 reference: loosened tolerance.
    assert jnp.allclose(out, ref, atol=5e-2, rtol=5e-2), float(jnp.max(jnp.abs(out - ref)))

    print("KERNEL_OK")
</pallas_src>

<mosaic_0001>
module attributes {stable_mosaic.version = 11 : i64} {
  func.func @cam_head_kernel(%arg0: i32, %arg1: i32, %arg2: memref<1x512x64xbf16, #tpu.memory_space<vmem>>, %arg3: memref<20x512xbf16, #tpu.memory_space<vmem>>, %arg4: memref<1x20x64xf32, #tpu.memory_space<vmem>>) attributes {dimension_semantics = [#tpu.dimension_semantics<parallel>, #tpu.dimension_semantics<arbitrary>], iteration_bounds = array<i64: 2, 4>, scalar_prefetch = 0 : i64, scratch_operands = 0 : i64, tpu.core_type = #tpu.core_type<tc>, window_params = [{transform_indices = @transform_0, window_bounds = array<i64: 1, 512, 64>}, {transform_indices = @transform_1, window_bounds = array<i64: 20, 512>}, {transform_indices = @transform_2, window_bounds = array<i64: 1, 20, 64>}]} {
    %c0_i32 = arith.constant 0 : i32
    %0 = arith.cmpi eq, %arg1, %c0_i32 : i32
    %1 = arith.extui %0 : i1 to i32
    %c0_i32_0 = arith.constant 0 : i32
    %2 = arith.cmpi ne, %1, %c0_i32_0 : i32
    scf.if %2 {
      %cst_12 = arith.constant 0.000000e+00 : f32
      %16 = vector.broadcast %cst_12 : f32 to vector<20x64xf32>
      %c0_13 = arith.constant 0 : index
      %c0_14 = arith.constant 0 : index
      %c0_15 = arith.constant 0 : index
      %17 = vector.load %arg4[%c0_13, %c0_14, %c0_15] : memref<1x20x64xf32, #tpu.memory_space<vmem>>, vector<1x20x64xf32>
      %18 = vector.shape_cast %17 : vector<1x20x64xf32> to vector<20x64xf32>
      %19 = vector.shape_cast %16 : vector<20x64xf32> to vector<1x20x64xf32>
      tpu.vector_store %arg4[%c0_13, %c0_14, %c0_15], %19 {strides = array<i32>} : memref<1x20x64xf32, #tpu.memory_space<vmem>>, vector<1x20x64xf32>,
    } else {
    }
    %c0 = arith.constant 0 : index
    %c0_1 = arith.constant 0 : index
    %c0_2 = arith.constant 0 : index
    %3 = vector.load %arg4[%c0, %c0_1, %c0_2] : memref<1x20x64xf32, #tpu.memory_space<vmem>>, vector<1x20x64xf32>
    %4 = vector.shape_cast %3 : vector<1x20x64xf32> to vector<20x64xf32>
    %c0_3 = arith.constant 0 : index
    %c0_4 = arith.constant 0 : index
    %5 = vector.load %arg3[%c0_3, %c0_4] : memref<20x512xbf16, #tpu.memory_space<vmem>>, vector<20x512xbf16>
    %c0_5 = arith.constant 0 : index
    %c0_6 = arith.constant 0 : index
    %c0_7 = arith.constant 0 : index
    %6 = vector.load %arg2[%c0_5, %c0_6, %c0_7] : memref<1x512x64xbf16, #tpu.memory_space<vmem>>, vector<1x512x64xbf16>
    %7 = vector.shape_cast %6 : vector<1x512x64xbf16> to vector<512x64xbf16>
    %cst = arith.constant dense<0.000000e+00> : vector<20x64xf32>
    %8 = tpu.matmul %5, %7, %cst {dimension_numbers = #tpu.dot_dimension_numbers<[1], [0], [0], [1], [0, 0, 1, 1], [], []>} : vector<20x512xbf16>, vector<512x64xbf16>, vector<20x64xf32> -> vector<20x64xf32>
    %9 = arith.addf %4, %8 : vector<20x64xf32>
    %c0_8 = arith.constant 0 : index
    %c0_9 = arith.constant 0 : index
    %c0_10 = arith.constant 0 : index
    %10 = vector.load %arg4[%c0_8, %c0_9, %c0_10] : memref<1x20x64xf32, #tpu.memory_space<vmem>>, vector<1x20x64xf32>
    %11 = vector.shape_cast %10 : vector<1x20x64xf32> to vector<20x64xf32>
    %12 = vector.shape_cast %9 : vector<20x64xf32> to vector<1x20x64xf32>
    tpu.vector_store %arg4[%c0_8, %c0_9, %c0_10], %12 {strides = array<i32>} : memref<1x20x64xf32, #tpu.memory_space<vmem>>, vector<1x20x64xf32>,
    %c3_i32 = arith.constant 3 : i32
    %13 = arith.cmpi eq, %arg1, %c3_i32 : i32
    %14 = arith.extui %13 : i1 to i32
    %c0_i32_11 = arith.constant 0 : i32
    %15 = arith.cmpi ne, %14, %c0_i32_11 : i32
    scf.if %15 {
      %c0_12 = arith.constant 0 : index
      %c0_13 = arith.constant 0 : index
      %c0_14 = arith.constant 0 : index
      %16 = vector.load %arg4[%c0_12, %c0_13, %c0_14] : memref<1x20x64xf32, #tpu.memory_space<vmem>>, vector<1x20x64xf32>
      %17 = vector.shape_cast %16 : vector<1x20x64xf32> to vector<20x64xf32>
      %cst_15 = arith.constant 0.000000e+00 : f32
      %18 = vector.broadcast %cst_15 : f32 to vector<20x64xf32>
      %19 = arith.maximumf %17, %18 : vector<20x64xf32>
      %c0_16 = arith.constant 0 : index
      %c0_17 = arith.constant 0 : index
      %c0_18 = arith.constant 0 : index
      %20 = vector.load %arg4[%c0_16, %c0_17, %c0_18] : memref<1x20x64xf32, #tpu.memory_space<vmem>>, vector<1x20x64xf32>
      %21 = vector.shape_cast %20 : vector<1x20x64xf32> to vector<20x64xf32>
      %22 = vector.shape_cast %19 : vector<20x64xf32> to vector<1x20x64xf32>
      tpu.vector_store %arg4[%c0_16, %c0_17, %c0_18], %22 {strides = array<i32>} : memref<1x20x64xf32, #tpu.memory_space<vmem>>, vector<1x20x64xf32>,
    } else {
    }
    return
  }
  func.func @transform_0(%arg0: i32, %arg1: i32) -> (i32, i32, i32) {
    %c0_i32 = arith.constant 0 : i32
    %c0_i32_0 = arith.constant 0 : i32
    return %arg0, %arg1, %c0_i32 : i32, i32, i32
  }
  func.func @transform_1(%arg0: i32, %arg1: i32) -> (i32, i32) {
    %c0_i32 = arith.constant 0 : i32
    %c0_i32_0 = arith.constant 0 : i32
    return %c0_i32, %arg1 : i32, i32
  }
  func.func @transform_2(%arg0: i32, %arg1: i32) -> (i32, i32, i32) {
    %c0_i32 = arith.constant 0 : i32
    %c0_i32_0 = arith.constant 0 : i32
    %c0_i32_1 = arith.constant 0 : i32
    return %arg0, %c0_i32, %c0_i32_0 : i32, i32, i32
  }
}

</mosaic_0001>

<bundles_post_ra>
// kernel: cam_head.1
= control target key start
LH: loop header
LB: loop body
LE: loop exit
PB: predicated region body
PF: predicated region fallthrough
CT: control target
= control target key end

     0   :  { %s1042_s9 = smov 0   ;;  %s1044_s10 = smov 0   ;;  %s1201_s0 = inlined_call_operand.vmem [shape: bf16[2,2048,64], index: 0, kind: input, shape index: {}]   ;;  %s1202_s1 = inlined_call_operand.vmem [shape: bf16[20,2048], index: 1, kind: input, shape index: {}]   ;;  %s1203_s2 = inlined_call_operand.vmem [shape: f32[2,20,64], index: 2, kind: output, shape index: {}]  }
   0x1   :  { %s1046_s11 = smov 0   ;;  %s1048_s12 = smov 0  }
   0x2   :  { %s1050_s13 = smov 0   ;;  %s1052_s14 = smov 0  }
   0x3   :  { %s1054_s15 = smov 0  }
   0x4 LB: > { %s21_s16 = sadd.s32 1, %s1016_s13  ;;  %s24_s17 = sadd.s32 1, %s1020_s14  ;;  %s1024_s15 = sphi %s1054_s15, %s12_s15   ;;  %s1020_s14 = sphi %s1052_s14, %s1209_s14   ;;  %s1016_s13 = sphi %s1050_s13, %s1208_s13   ;;  %s1012_s12 = sphi %s1048_s12, %s1207_s12   ;;  %s1008_s11 = sphi %s1046_s11, %s1206_s11   ;;  %s1004_s10 = sphi %s1044_s10, %s1205_s10   ;;  %s1000_s9 = sphi %s1042_s9, %s1204_s9  }
   0x5   : > { %p22_p0 = scmp.ge.s32.totalorder %s21_s16, 4  ;;  %s59_s18 = sadd.s32 1, %s1004_s10 }
   0x6   : > { %p66_p1 = scmp.ne.s32.totalorder %s1004_s10, %s1000_s9  ;;  %p67_p2 = scmp.eq.s32.totalorder %s1024_s15, 0 }
   0x7   : > { %s1211_s16 = smov (%p22_p0, %s21_s16), 0  ;;  %s1213_s17 = smov (!%p22_p0, %s24_s17), %s1020_s14 }
   0x8   : > { %s56_s19 = ssub.s32 %s1016_s13, %s1211_s16  ;;  %p68_p3 = por %p67_p2, %p66_p1 }
   0x9   : > { %p26_p4 = scmp.ge.s32.totalorder %s1213_s17, 2  ;;  %p57_p5 = scmp.eq.s32.totalorder %s56_s19, 0 }
   0xa   : > { %p717_p6 = scmp.ge.s32.totalorder %s1024_s15, 8 }
   0xb   : > { %s1215_s17 = smov (%p26_p4, %s1213_s17), 0 }
   0xc   : > { %s1091_s20 = scalar_select %p57_p5, %s1004_s10, %s59_s18  }
   0xd   : > { %118 = sbr.rel (%p717_p6) target bundleno = 28 (0x1c), region = 16 }
  0x12   : > { %134 = sbr.rel (!%p68_p3) target bundleno = 28 (0x1c), region = 24  ;;  %s136_s21 = sand.u32 (%p68_p3), 1, %s1004_s10  }
  0x13   : > { %s873_s22 = sshll.u32 (%p68_p3), %s1016_s13, 4  ;;  %s910_s23 = smul.u32 (%p68_p3), 48, %s136_s21 }
  0x14   : > { %s141_s26 = scalar_lea.vmem (%p68_p3), %s1202_s1, %s873_s22 }
  0x15   : > { %v154_v0 = vld [vmem:[%s141_s26] sm:$0xff] (%p68_p3)  ;;  %v156_v1 = vld [vmem:[%s141_s26 + $0x8] sm:$0xff] (%p68_p3)  ;;  %s138_s27 = scalar_lea.vmem (%p68_p3), [#allocation2], %s910_s23 }
  0x16   : > { %v158_v2 = vld [vmem:[%s141_s26 + $0x40] sm:$0xff] (%p68_p3)  ;;  %155 = vst [vmem:[%s138_s27] sm:$0xff] (%p68_p3), %v154_v0  ;;  %v160_v3 = vld [vmem:[%s141_s26 + $0x48] sm:$0xff] (%p68_p3) }
  0x17   : > { %157 = vst [vmem:[%s138_s27 + $0x8] sm:$0xff] %v156_v1  ;;  %v162_v4 = vld [vmem:[%s141_s26 + $0x80] sm:$0xff]  ;;  %v164_v5 = vld [vmem:[%s141_s26 + $0x88] sm:$0xff] }
  0x18   : > { %159 = vst [vmem:[%s138_s27 + $0x10] sm:$0xff] %v158_v2 }
  0x19   : > { %161 = vst [vmem:[%s138_s27 + $0x18] sm:$0xff] %v160_v3 }
  0x1a   : > { %163 = vst [vmem:[%s138_s27 + $0x20] sm:$0xff] %v162_v4 }
  0x1b   : > { %165 = vst [vmem:[%s138_s27 + $0x28] sm:$0xff] %v164_v5 }
  0x1c PF: > { %p720_p7 = scmp.ge.s32.totalorder %s1024_s15, 1  ;;  %p170_p8 = scmp.lt.s32.totalorder %s1024_s15, 9 }
  0x1e   : > { %p171_p9 = pnand %p720_p7, %p170_p8 }
  0x1f   : > { %s177_s28 = sand.u32 (!%p171_p9), 1, %s1000_s9   ;;  %s721_s29 = sshll.u32 (!%p171_p9), %s1008_s11, 6 }
  0x20   : > { %174 = sbr.rel (%p171_p9) target bundleno = 247 (0xf7), region = 47  ;;  %p208_p10 = scmp.lt.s32.totalorder (!%p171_p9), %s1012_s12, 1 }
  0x21   : > { %s911_s30 = smul.u32 (!%p171_p9), 48, %s177_s28  ;;  %p210_p11 = scmp.lt.s32.totalorder (!%p171_p9), %s721_s29, 255 }
  0x22   : > { %p725_p12 = scmp.ne.s32.totalorder (!%p171_p9), %s1008_s11, 0 }
  0x23   : > { %s1115_s9 = scalar_lea.vmem (!%p171_p9), [#allocation2], %s911_s30 }
  0x25   : > { %s1217_s12 = smov (!%p208_p10, %s1012_s12), 1  ;;  %s1219_s29 = smov (!%p210_p11, %s721_s29), 255 }
  0x26   : > { %s722_s3 = sshll.u32 %s1217_s12, 8  ;;  %s912_s4 = smul.u32 24, %s1217_s12 }
  0x27   : > { %s213_s5 = sadd.s32 %s722_s3, %s1219_s29  ;;  %226 = sbr.rel (%p725_p12) target bundleno = 48 (0x30), region = 55 }
  0x28   : > { %s723_s6 = sshll.u32 %s213_s5, 2  ;;  %s1108_s18 = scalar_lea.vmem %s1203_s2, %s912_s4 }
  0x29   : > { %s1113_s22 = scalar_lea.vmem %s1201_s0, %s723_s6 }
  0x2c   : > { %vm227_vm0 = vcmask 523264   ;;  %vm230_vm1 = vcmask 519168   ;;  %v1026_v6 = vmov 0.0  }
  0x2d   : > { %228 = vst.msk [vmem:[%s1108_s18] sm:$0xff] %vm227_vm0, %v1026_v6 }
  0x2e   : > { %229 = vst.msk [vmem:[%s1108_s18 + $0x8] sm:$0xff] %vm227_vm0, %v1026_v6 }
  0x2f   : > { %231 = vst.msk [vmem:[%s1108_s18 + $0x10] sm:$0xf] %vm230_vm1, %v1026_v6 }
  0x30 PF: > { %v885_v7 = vld [vmem:[%s1113_s22 + $0x38] sm:$0xff]  ;;  %v884_v11 = vld [vmem:[%s1113_s22 + $0x30] sm:$0xff]  ;;  %v883_v15 = vld [vmem:[%s1113_s22 + $0x28] sm:$0xff]  ;;  %vm606_vm2 = vcmask 523264   ;;  %vm609_vm3 = vcmask 519168   ;;  %p870_p13 = scmp.ne.s32.totalorder %s1008_s11, 3 }
  0x31   : > { %v893_v8 = vld [vmem:[%s1113_s22 + $0x78] sm:$0xff]  ;;  %531 = vmatpush.bf16.msra.mxu0 %v885_v7  ;;  %v892_v12 = vld [vmem:[%s1113_s22 + $0x70] sm:$0xff]  ;;  %v891_v16 = vld [vmem:[%s1113_s22 + $0x68] sm:$0xff] }
  0x32   : > { %v901_v9 = vld [vmem:[%s1113_s22 + $0xb8] sm:$0xff]  ;;  %549 = vmatpush.bf16.msra.mxu1 %v893_v8  ;;  %v900_v13 = vld [vmem:[%s1113_s22 + $0xb0] sm:$0xff]  ;;  %v899_v17 = vld [vmem:[%s1113_s22 + $0xa8] sm:$0xff] }
  0x33   : > { %v909_v10 = vld [vmem:[%s1113_s22 + $0xf8] sm:$0xff]  ;;  %567 = vmatpush.bf16.msra.mxu2 %v901_v9  ;;  %v908_v14 = vld [vmem:[%s1113_s22 + $0xf0] sm:$0xff]  ;;  %v907_v18 = vld [vmem:[%s1113_s22 + $0xe8] sm:$0xff] }
  0x34   : > { %585 = vmatpush.bf16.msra.mxu3 %v909_v10  ;;  %v882_v19 = vld [vmem:[%s1113_s22 + $0x20] sm:$0xff]  ;;  %v881_v23 = vld [vmem:[%s1113_s22 + $0x18] sm:$0xff]  ;;  %v880_v27 = vld [vmem:[%s1113_s22 + $0x10] sm:$0xff] }
  0x35   : > { %532 = vmatpush.bf16.msra.mxu0 %v884_v11  ;;  %v890_v20 = vld [vmem:[%s1113_s22 + $0x60] sm:$0xff]  ;;  %v889_v24 = vld [vmem:[%s1113_s22 + $0x58] sm:$0xff]  ;;  %v888_v28 = vld [vmem:[%s1113_s22 + $0x50] sm:$0xff] }
  0x36   : > { %550 = vmatpush.bf16.msra.mxu1 %v892_v12  ;;  %v898_v21 = vld [vmem:[%s1113_s22 + $0xa0] sm:$0xff]  ;;  %v897_v25 = vld [vmem:[%s1113_s22 + $0x98] sm:$0xff]  ;;  %v896_v29 = vld [vmem:[%s1113_s22 + $0x90] sm:$0xff] }
  0x37   : > { %568 = vmatpush.bf16.msra.mxu2 %v900_v13  ;;  %v906_v22 = vld [vmem:[%s1113_s22 + $0xe0] sm:$0xff]  ;;  %v905_v26 = vld [vmem:[%s1113_s22 + $0xd8] sm:$0xff]  ;;  %v904_v30 = vld [vmem:[%s1113_s22 + $0xd0] sm:$0xff] }
  0x38   : > { %586 = vmatpush.bf16.msra.mxu3 %v908_v14  ;;  %v879_v31 = vld [vmem:[%s1113_s22 + $0x8] sm:$0xff]  ;;  %v878_v35 = vld [vmem:[%s1113_s22] sm:$0xff] }
  0x39   : > { %533 = vmatpush.bf16.msra.mxu0 %v883_v15  ;;  %v887_v32 = vld [vmem:[%s1113_s22 + $0x48] sm:$0xff]  ;;  %v886_v36 = vld [vmem:[%s1113_s22 + $0x40] sm:$0xff] }
  0x3a   : > { %551 = vmatpush.bf16.msra.mxu1 %v891_v16  ;;  %v895_v33 = vld [vmem:[%s1113_s22 + $0x88] sm:$0xff]  ;;  %v894_v37 = vld [vmem:[%s1113_s22 + $0x80] sm:$0xff] }
  0x3b   : > { %569 = vmatpush.bf16.msra.mxu2 %v899_v17  ;;  %v903_v34 = vld [vmem:[%s1113_s22 + $0xc8] sm:$0xff]  ;;  %v902_v38 = vld [vmem:[%s1113_s22 + $0xc0] sm:$0xff] }
  0x3c   : > { %587 = vmatpush.bf16.msra.mxu3 %v907_v18  ;;  %v728_v39 = vld [vmem:[%s1115_s9] sm:$0xf]  ;;  %v876_v40 = vld [vmem:[%s1115_s9 + $0xc] sm:$0xf0]  ;;  %v874_v41 = vld [vmem:[%s1115_s9 + $0x4] sm:$0xf] }
  0x3d   : > { %534 = vmatpush.bf16.msra.mxu0 %v882_v19  ;;  %v730_v42 = vld [vmem:[%s1115_s9 + $0x10] sm:$0xf0]  ;;  %v736_v43 = vld [vmem:[%s1115_s9 + $0x8] sm:$0xf]  ;;  %v877_v44 = vld [vmem:[%s1115_s9 + $0x14] sm:$0xf0]  ;;  %v729_v47 = vor.u32 %v876_v40, %v728_v39 }
  0x3e   : > { %552 = vmatpush.bf16.msra.mxu1 %v890_v20  ;;  %v875_v45 = vld [vmem:[%s1115_s9 + $0xc] sm:$0xf]  ;;  %v738_v46 = vld [vmem:[%s1115_s9 + $0x18] sm:$0xf0]  ;;  %v733_v48 = vor.u32 %v874_v41, %v730_v42  ;;  %v737_v49 = vor.u32 %v877_v44, %v736_v43  ;;  %v239_v51 = vld [vmem:[%s1115_s9 + $0x20] sm:$0x33] }
  0x3f   : > { %570 = vmatpush.bf16.msra.mxu2 %v898_v21  ;;  %v741_v50 = vor.u32 %v875_v45, %v738_v46  ;;  %v240_v52 = vld [vmem:[%s1115_s9 + $0x28] sm:$0x33]  ;;  %v319_v53 = vunpack.c.l.b16 %v239_v51  ;;  %v320_v54 = vunpack.c.h.b16 %v239_v51  ;;  %v232_v5 = vld [vmem:[%s1108_s18] sm:$0xff] }
  0x40   : > { %588 = vmatpush.bf16.msra.mxu3 %v906_v22  ;;  %v321_v55 = vunpack.c.l.b16 %v240_v52  ;;  %v322_v56 = vunpack.c.h.b16 %v240_v52  ;;  %v233_v14 = vld [vmem:[%s1108_s18 + $0x8] sm:$0xff] }
  0x41   : > { %535 = vmatpush.bf16.msra.mxu0 %v881_v23  ;;  %v327_v57 = vpack.c.b16 %v319_v53, %v319_v53  ;;  %v328_v58 = vpack.c.b16 %v320_v54, %v320_v54  ;;  %v234_v23 = vld [vmem:[%s1108_s18 + $0x10] sm:$0xf] }
  0x42   : > { %553 = vmatpush.bf16.msra.mxu1 %v889_v24  ;;  %v329_v59 = vpack.c.b16 %v321_v55, %v321_v55  ;;  %v330_v60 = vpack.c.b16 %v322_v56, %v322_v56 }
  0x43   : > { %571 = vmatpush.bf16.msra.mxu2 %v897_v25 }
  0x44   : > { %589 = vmatpush.bf16.msra.mxu3 %v905_v26 }
  0x45   : > { %536 = vmatpush.bf16.msra.mxu0 %v880_v27 }
  0x46   : > { %554 = vmatpush.bf16.msra.mxu1 %v888_v28 }
  0x47   : > { %572 = vmatpush.bf16.msra.mxu2 %v896_v29 }
  0x48   : > { %590 = vmatpush.bf16.msra.mxu3 %v904_v30 }
  0x49   : > { %537 = vmatpush.bf16.msra.mxu0 %v879_v31 }
  0x4a   : > { %555 = vmatpush.bf16.msra.mxu1 %v887_v32 }
  0x4b   : > { %573 = vmatpush.bf16.msra.mxu2 %v895_v33 }
  0x4c   : > { %591 = vmatpush.bf16.msra.mxu3 %v903_v34 }
  0x4d   : > { %538 = vmatpush.bf16.msra.mxu0 %v878_v35 }
  0x4e   : > { %556 = vmatpush.bf16.msra.mxu1 %v886_v36 }
  0x4f   : > { %574 = vmatpush.bf16.msra.mxu2 %v894_v37 }
  0x50   : > { %592 = vmatpush.bf16.msra.mxu3 %v902_v38  ;;  %539 = vmatmul.bf16.vlgmr.msra.gmra.mxu0 %v729_v47 }
  0x51   : > { %557 = vmatmul.bf16.vlgmr.msra.gmra.mxu1 %v733_v48 }
  0x52   : > { %575 = vmatmul.bf16.vlgmr.msra.gmra.mxu2 %v737_v49 }
  0x53   : > { %593 = vmatmul.bf16.vlgmr.msra.gmra.mxu3 %v741_v50 }
  0x60   : > { %544 = vmatmul.bf16.gmra.mxu0 %v327_v57 }
  0x61   : > { %562 = vmatmul.bf16.gmra.mxu1 %v328_v58 }
  0x62   : > { %580 = vmatmul.bf16.gmra.mxu2 %v329_v59 }
  0x63   : > { %598 = vmatmul.bf16.gmra.mxu3 %v330_v60 }
  0xcd   : > { %v540_v61 = vpop.f32.mrf.mxu0 }
  0xce   : > { %v558_v62 = vpop.f32.mrf.mxu1 }
  0xcf   : > { %v559_v63 = vadd.f32 %v558_v62, %v540_v61 }
  0xd5   : > { %v576_v0 = vpop.f32.mrf.mxu2  ;;  %v542_v3 = vpop.f32.mrf.mxu0 }
  0xd6   : > { %v594_v1 = vpop.f32.mrf.mxu3  ;;  %v577_v2 = vadd.f32 %v576_v0, %v559_v63  ;;  %v560_v4 = vpop.f32.mrf.mxu1 }
  0xd7   : > { %v561_v8 = vadd.f32 %v560_v4, %v542_v3 }
  0xd8   : > { %v595_v6 = vadd.f32 %v594_v1, %v577_v2 }
  0xda   : > { %v603_v7 = vadd.f32 %v595_v6, %v232_v5 }
  0xdc   : > { %607 = vst.msk [vmem:[%s1108_s18] sm:$0xff] %vm606_vm2, %v603_v7 }
  0xdd   : > { %v578_v9 = vpop.f32.mrf.mxu2  ;;  %v545_v12 = vpop.f32.mrf.mxu0 }
  0xde   : > { %v596_v10 = vpop.f32.mrf.mxu3  ;;  %v579_v11 = vadd.f32 %v578_v9, %v561_v8  ;;  %v563_v13 = vpop.f32.mrf.mxu1 }
  0xdf   : > { %v564_v17 = vadd.f32 %v563_v13, %v545_v12 }
  0xe0   : > { %v597_v15 = vadd.f32 %v596_v10, %v579_v11 }
  0xe2   : > { %v604_v16 = vadd.f32 %v597_v15, %v233_v14 }
  0xe4   : > { %608 = vst.msk [vmem:[%s1108_s18 + $0x8] sm:$0xff] %vm606_vm2, %v604_v16 }
  0xe5   : > { %v581_v18 = vpop.f32.mrf.mxu2  ;;  %v547_v21 = vpop.f32.mrf.mxu0 }
  0xe6   : > { %v599_v19 = vpop.f32.mrf.mxu3  ;;  %v582_v20 = vadd.f32 %v581_v18, %v564_v17  ;;  %v565_v22 = vpop.f32.mrf.mxu1 }
  0xe8   : > { %v600_v24 = vadd.f32 %v599_v19, %v582_v20 }
  0xea   : > { %v605_v25 = vadd.f32 %v600_v24, %v234_v23  ;;  %614 = sbr.rel (%p870_p13) target bundleno = 247 (0xf7), region = 59 }
  0xec   : > { %610 = vst.msk [vmem:[%s1108_s18 + $0x10] sm:$0xf] %vm609_vm3, %v605_v25 }
  0xed   : > { %v583_v26 = vpop.f32.mrf.mxu2 }
  0xee   : > { %v601_v27 = vpop.f32.mrf.mxu3 }
  0xef   : > { %v615_v28 = vld [vmem:[%s1108_s18] sm:$0xff]  ;;  %v616_v29 = vld [vmem:[%s1108_s18 + $0x8] sm:$0xff] }
  0xf0   : > { %v618_v31 = vmax.f32 %v615_v28, 0.0  ;;  %v619_v32 = vmax.f32 %v616_v29, 0.0 }
  0xf2   : > { %621 = vst.msk [vmem:[%s1108_s18] sm:$0xff] %vm606_vm2, %v618_v31 }
  0xf3   : > { %v617_v30 = vld [vmem:[%s1108_s18 + $0x10] sm:$0xf]  ;;  %622 = vst.msk [vmem:[%s1108_s18 + $0x8] sm:$0xff] %vm606_vm2, %v619_v32 }
  0xf4   : > { %v620_v33 = vmax.f32 %v617_v30, 0.0 }
  0xf6   : > { %623 = vst.msk [vmem:[%s1108_s18 + $0x10] sm:$0xf] %vm609_vm3, %v620_v33 }
  0xf7 PF: > { %s12_s15 = sadd.s32 1, %s1024_s15   ;;  %s1204_s9 = smov %s1004_s10 }
  0xf8   : > { %p9_p0 = scmp.ge.s32.totalorder %s12_s15, 10   ;;  %s1205_s10 = smov %s1091_s20 }
  0xf9   : > { %s1206_s11 = smov %s1016_s13  ;;  %s1207_s12 = smov %s1020_s14 }
  0xfa   : > { %s1208_s13 = smov %s1211_s16  ;;  %s1209_s14 = smov %s1215_s17 }
  0xfb   :  { %11 = sbr.rel (!%p9_p0) target bundleno = 4 (0x4), region = 97 }

</bundles_post_ra>
